<compile_context>
chip_gen: v6e
topology: v6e:2x2x1
jax: 0.10.0
libtpu: 0.0.40
codegen_flags: <defaults>
</compile_context>

<pallas_src>
import jax
import jax.numpy as jnp
from jax.experimental import pallas as pl
from jax.experimental.pallas import tpu as pltpu


def _round_up(n, m):
    return ((n + m - 1) // m) * m


# ----------------------------------------------------------------------------
# Kernel: one VMEM-resident block, two MXU matmuls, f32 accumulation,
#         f32 broadcast bias adds + ReLU on the VPU, lane-dense output store.
# ----------------------------------------------------------------------------
def _mlp_kernel(x_ref, w1_ref, b1_ref, w2_ref, b2_ref, o_ref):
    # linear1: (Bp, InPad) @ (InPad, HPad) -> f32 accumulator
    h = jnp.dot(x_ref[...], w1_ref[...], preferred_element_type=jnp.float32)
    # bias1 (f32 broadcast row) + ReLU on the f32 accumulator (VPU)
    h = jnp.maximum(h + b1_ref[...], 0.0)
    # linear2: (Bp, HPad) @ (HPad, OutPad) -> f32 accumulator
    y = jnp.dot(h.astype(w2_ref.dtype), w2_ref[...],
                preferred_element_type=jnp.float32)
    # bias2 (f32 broadcast row), then lane-dense store
    o_ref[...] = (y + b2_ref[...]).astype(o_ref.dtype)


# ----------------------------------------------------------------------------
# One-time parameter preparation (hoisted out of the per-call path).
# ----------------------------------------------------------------------------
def prepare_padded_params(w1, b1, w2, b2, *, compute_dtype=jnp.bfloat16):
    """Build padded, pre-cast weight/bias slabs once.

    w1 : (input_size, hidden_size)  (pre-transposed nn.Linear weight)
    b1 : (hidden_size,)
    w2 : (hidden_size, output_size) (pre-transposed nn.Linear weight)
    b2 : (output_size,)
    """
    in_sz, hid = w1.shape
    out_sz = w2.shape[1]
    in_pad = _round_up(max(in_sz, 128), 128)
    hid_pad = _round_up(max(hid, 128), 128)
    out_pad = _round_up(max(out_sz, 128), 128)

    w1_p = jnp.zeros((in_pad, hid_pad), compute_dtype)
    w1_p = w1_p.at[:in_sz, :hid].set(w1.astype(compute_dtype))

    b1_p = jnp.zeros((1, hid_pad), jnp.float32)
    b1_p = b1_p.at[0, :hid].set(b1.astype(jnp.float32))

    w2_p = jnp.zeros((hid_pad, out_pad), compute_dtype)
    w2_p = w2_p.at[:hid, :out_sz].set(w2.astype(compute_dtype))

    b2_p = jnp.zeros((1, out_pad), jnp.float32)
    b2_p = b2_p.at[0, :out_sz].set(b2.astype(jnp.float32))

    meta = dict(input_size=in_sz, hidden_size=hid, output_size=out_sz,
                in_pad=in_pad, hid_pad=hid_pad, out_pad=out_pad,
                compute_dtype=compute_dtype)
    return (w1_p, b1_p, w2_p, b2_p), meta


# ----------------------------------------------------------------------------
# Per-call wrapper: cast + pad x, one grid-less pallas_call, slice output.
# ----------------------------------------------------------------------------
def cimm_common_forward(x, padded_params, meta):
    """Pallas equivalent of BaseCIMMModel.common_forward.

    x : (B, input_size) or (input_size,)  -- 1-D input is unsqueezed like torch
    """
    w1_p, b1_p, w2_p, b2_p = padded_params
    in_sz = meta["input_size"]
    out_sz = meta["output_size"]
    in_pad = meta["in_pad"]
    hid_pad = meta["hid_pad"]
    out_pad = meta["out_pad"]
    compute_dtype = meta["compute_dtype"]

    if x.ndim == 1:
        x = x[None, :]  # torch's unsqueeze(0)
    B = x.shape[0]

    # bf16 vreg packs [16, 128] -> pad batch to 16 sublanes.
    b_pad = _round_up(max(B, 16), 16)

    # Per-call x prep: one cast + one pad (padded rows/cols are zero; their
    # garbage outputs are sliced off below).
    x_p = jnp.pad(x.astype(compute_dtype),
                  ((0, b_pad - B), (0, in_pad - in_sz)))

    itemsize_c = jnp.dtype(compute_dtype).itemsize
    cost = pl.CostEstimate(
        flops=2 * b_pad * in_pad * hid_pad + 2 * b_pad * hid_pad * out_pad,
        transcendentals=0,
        bytes_accessed=(x_p.size * itemsize_c
                        + w1_p.size * itemsize_c + w2_p.size * itemsize_c
                        + b1_p.size * 4 + b2_p.size * 4
                        + b_pad * out_pad * 4),
    )

    vmem = pl.BlockSpec(memory_space=pltpu.MemorySpace.VMEM)
    out = pl.pallas_call(
        _mlp_kernel,
        out_shape=jax.ShapeDtypeStruct((b_pad, out_pad), jnp.float32),
        in_specs=[vmem, vmem, vmem, vmem, vmem],
        out_specs=vmem,
        cost_estimate=cost,
    )(x_p, w1_p, b1_p, w2_p, b2_p)

    return out[:B, :out_sz]


# ----------------------------------------------------------------------------
# References & init
# ----------------------------------------------------------------------------
def _reference_mixed(x, w1, b1, w2, b2, compute_dtype=jnp.bfloat16):
    """Pure-JAX reference following the exact mixed-precision recipe."""
    h = jnp.dot(x.astype(compute_dtype), w1.astype(compute_dtype),
                preferred_element_type=jnp.float32)
    h = jnp.maximum(h + b1.astype(jnp.float32), 0.0)
    y = jnp.dot(h.astype(compute_dtype), w2.astype(compute_dtype),
                preferred_element_type=jnp.float32)
    return y + b2.astype(jnp.float32)


def init_params(key, input_size, hidden_size, output_size, dtype=jnp.float32):
    """Deterministic parameter init (shapes match the nn.Linear layers)."""
    k1, k2, k3, k4 = jax.random.split(key, 4)
    bound1 = 1.0 / jnp.sqrt(input_size)
    bound2 = 1.0 / jnp.sqrt(hidden_size)
    # weights stored pre-transposed: (in, out)
    w1 = jax.random.uniform(k1, (input_size, hidden_size), dtype,
                            minval=-bound1, maxval=bound1)
    b1 = jax.random.uniform(k2, (hidden_size,), dtype,
                            minval=-bound1, maxval=bound1)
    w2 = jax.random.uniform(k3, (hidden_size, output_size), dtype,
                            minval=-bound2, maxval=bound2)
    b2 = jax.random.uniform(k4, (output_size,), dtype,
                            minval=-bound2, maxval=bound2)
    return w1, b1, w2, b2


if __name__ == "__main__":
    # BaseCIMMModel(input_size=16, hidden_size=32, output_size=8)
    input_size, hidden_size, output_size = 16, 32, 8
    batch = 2

    key = jax.random.PRNGKey(0)
    kx, kp = jax.random.split(key)
    x = jax.random.normal(kx, (batch, input_size), dtype=jnp.float32)
    w1, b1, w2, b2 = init_params(kp, input_size, hidden_size, output_size)

    # One-time: padded, bias-separated, bf16 weight slabs.
    padded_params, meta = prepare_padded_params(w1, b1, w2, b2)
    padded_params = jax.tree_util.tree_map(jax.block_until_ready, padded_params)

    fwd = jax.jit(lambda xx: cimm_common_forward(xx, padded_params, meta))

    y = fwd(x)
    jax.block_until_ready(y)
    assert y.shape == (batch, output_size)

    # Exact-recipe reference (bf16 matmul operands, f32 accumulation & biases).
    ref_bf = _reference_mixed(x, w1, b1, w2, b2)
    assert jnp.allclose(y, ref_bf, atol=5e-3, rtol=5e-3)

    # Full-f32 reference (same semantics as torch common_forward), with
    # tolerance appropriate for bf16 MXU operands.
    ref_f32 = jnp.maximum(x @ w1 + b1, 0.0) @ w2 + b2
    assert jnp.allclose(y, ref_f32, atol=5e-2, rtol=5e-2)

    # 1-D input path (torch unsqueeze(0) semantics)
    y1 = fwd(x[0])
    jax.block_until_ready(y1)
    assert y1.shape == (1, output_size)
    assert jnp.allclose(y1[0], y[0], atol=1e-5, rtol=1e-5)

    print("KERNEL_OK")
</pallas_src>

<mosaic_0001>
module attributes {stable_mosaic.version = 11 : i64} {
  func.func @_mlp_kernel(%arg0: memref<16x128xbf16, #tpu.memory_space<vmem>>, %arg1: memref<128x128xbf16, #tpu.memory_space<vmem>>, %arg2: memref<1x128xf32, #tpu.memory_space<vmem>>, %arg3: memref<128x128xbf16, #tpu.memory_space<vmem>>, %arg4: memref<1x128xf32, #tpu.memory_space<vmem>>, %arg5: memref<16x128xf32, #tpu.memory_space<vmem>>) attributes {dimension_semantics = [], scalar_prefetch = 0 : i64, scratch_operands = 0 : i64, tpu.core_type = #tpu.core_type<tc>} {
    %c0 = arith.constant 0 : index
    %c0_0 = arith.constant 0 : index
    %0 = vector.load %arg0[%c0, %c0_0] : memref<16x128xbf16, #tpu.memory_space<vmem>>, vector<16x128xbf16>
    %c0_1 = arith.constant 0 : index
    %c0_2 = arith.constant 0 : index
    %1 = vector.load %arg1[%c0_1, %c0_2] : memref<128x128xbf16, #tpu.memory_space<vmem>>, vector<128x128xbf16>
    %cst = arith.constant dense<0.000000e+00> : vector<16x128xf32>
    %2 = tpu.matmul %0, %1, %cst {dimension_numbers = #tpu.dot_dimension_numbers<[1], [0], [0], [1], [0, 0, 1, 1], [], []>} : vector<16x128xbf16>, vector<128x128xbf16>, vector<16x128xf32> -> vector<16x128xf32>
    %c0_3 = arith.constant 0 : index
    %c0_4 = arith.constant 0 : index
    %3 = vector.load %arg2[%c0_3, %c0_4] : memref<1x128xf32, #tpu.memory_space<vmem>>, vector<1x128xf32>
    %4 = vector.broadcast %3 : vector<1x128xf32> to vector<16x128xf32>
    %5 = arith.addf %2, %4 : vector<16x128xf32>
    %cst_5 = arith.constant 0.000000e+00 : f32
    %6 = vector.broadcast %cst_5 : f32 to vector<16x128xf32>
    %7 = arith.maximumf %5, %6 : vector<16x128xf32>
    %8 = arith.truncf %7 : vector<16x128xf32> to vector<16x128xbf16>
    %c0_6 = arith.constant 0 : index
    %c0_7 = arith.constant 0 : index
    %9 = vector.load %arg3[%c0_6, %c0_7] : memref<128x128xbf16, #tpu.memory_space<vmem>>, vector<128x128xbf16>
    %cst_8 = arith.constant dense<0.000000e+00> : vector<16x128xf32>
    %10 = tpu.matmul %8, %9, %cst_8 {dimension_numbers = #tpu.dot_dimension_numbers<[1], [0], [0], [1], [0, 0, 1, 1], [], []>} : vector<16x128xbf16>, vector<128x128xbf16>, vector<16x128xf32> -> vector<16x128xf32>
    %c0_9 = arith.constant 0 : index
    %c0_10 = arith.constant 0 : index
    %11 = vector.load %arg4[%c0_9, %c0_10] : memref<1x128xf32, #tpu.memory_space<vmem>>, vector<1x128xf32>
    %12 = vector.broadcast %11 : vector<1x128xf32> to vector<16x128xf32>
    %13 = arith.addf %10, %12 : vector<16x128xf32>
    %c0_11 = arith.constant 0 : index
    %c0_12 = arith.constant 0 : index
    %14 = vector.load %arg5[%c0_11, %c0_12] : memref<16x128xf32, #tpu.memory_space<vmem>>, vector<16x128xf32>
    tpu.vector_store %arg5[%c0_11, %c0_12], %13 {strides = array<i32>} : memref<16x128xf32, #tpu.memory_space<vmem>>, vector<16x128xf32>,
    return
  }
}

</mosaic_0001>

<bundles_post_ra>
// kernel: _lambda_.1
= control target key start
LH: loop header
LB: loop body
LE: loop exit
PB: predicated region body
PF: predicated region fallthrough
CT: control target
= control target key end

     0   :  { %10 = vsyncpa [#allocation3], 0  ;;  %s493_s0 = inlined_call_operand.vmem [shape: bf16[16,128], index: 0, kind: input, shape index: {}]   ;;  %s494_s1 = inlined_call_operand.hbm [shape: bf16[128,128], index: 1, kind: input, shape index: {}]   ;;  %s495_s2 = inlined_call_operand.vmem [shape: f32[1,128], index: 2, kind: input, shape index: {}]   ;;  %s496_s3 = inlined_call_operand.hbm [shape: bf16[128,128], index: 3, kind: input, shape index: {}]   ;;  %s497_s4 = inlined_call_operand.vmem [shape: f32[1,128], index: 4, kind: input, shape index: {}]   ;;  %s498_s5 = inlined_call_operand.vmem [shape: f32[16,128], index: 5, kind: output, shape index: {}]  }
   0x1   :  { %11 = vsyncpa [#allocation5], 0  ;;  %s436_s18 = smov [#allocation2]  }
   0x2   :  { %s19_s19 = sshll.u32 %s436_s18, 4  ;;  %s20_s19 = int_to_ptr.vmem [resolvable:$true] %s19_s19 }
   0x3   :  { %s400_s20 = scalar_lea.vmem %s20_s19, 1024  ;;  %p405_p1 = scmp.lt.s32.totalorder %s20_s19, %s20_s19 }
   0x4   :  { %p401_p0 = scmp.ne.s32.totalorder %s20_s19, %s400_s20  ;;  %p406_p2 = scmp.lt.s32.totalorder %s400_s20, %s400_s20 }
   0x6   :  { %p407_p3 = por %p406_p2, %p405_p1 }
   0x8   :  { %p408_p4 = pnand %p407_p3, %p401_p0 }
   0xa   :  { %411 = shalt.err (!%p408_p4)
}
   0xb   :  { %s437_s21 = smov 64   ;;  %s438_s22 = smov 4  }
   0xc   :  { %25 = dma.hbm_to_vmem [thread:$0]  %s494_s1, 1024, %s20_s19, [#allocation3], %s437_s21, %s437_s21, %s438_s22  }
   0xd   :  { %s439_s25 = smov [#allocation4]  }
   0xe   :  { %s33_s26 = sshll.u32 %s439_s25, 4  ;;  %s34_s26 = int_to_ptr.vmem [resolvable:$true] %s33_s26 }
   0xf   :  { %s420_s27 = scalar_lea.vmem %s34_s26, 1024  ;;  %p425_p6 = scmp.lt.s32.totalorder %s34_s26, %s34_s26 }
  0x10   :  { %p421_p5 = scmp.ne.s32.totalorder %s34_s26, %s420_s27  ;;  %p426_p7 = scmp.lt.s32.totalorder %s420_s27, %s420_s27 }
  0x12   :  { %p427_p8 = por %p426_p7, %p425_p6 }
  0x14   :  { %p428_p9 = pnand %p427_p8, %p421_p5 }
  0x16   :  { %431 = shalt.err (!%p428_p9)
}
  0x17   :  { %39 = dma.hbm_to_vmem [thread:$0]  %s496_s3, 1024, %s34_s26, [#allocation5], %s437_s21, %s437_s21, %s438_s22  }
  0x18   :  { %432 = dma.done.wait [#allocation3], 1024  }
  0x19   :  { %433 = vsyncadd [#allocation3], 4294966272 }
  0x1a   :  { %434 = dma.done.wait [#allocation5], 1024  }
  0x1b   :  { %435 = vsyncadd [#allocation5], 4294966272  ;;  %v440_v0 = vmov 0.0   ;;  %vm441_vm0 = vmmov 0   ;;  %v375_v1 = vld [vmem:[#allocation2 + $0x38] sm:$0xff]   ;;  %v376_v2 = vld [vmem:[#allocation2 + $0x30] sm:$0xff]  }
  0x1c   :  { %329 = vmatprep.subr.bf16.mxu0 %v440_v0  ;;  %345 = vmatprep.mubr.msk.bf16.mxu0 %vm441_vm0, %v440_v0  ;;  %v377_v3 = vld [vmem:[#allocation2 + $0x28] sm:$0xff]   ;;  %v384_v4 = vld [vmem:[#allocation4 + $0x38] sm:$0xff]   ;;  %v378_v5 = vld [vmem:[#allocation2 + $0x20] sm:$0xff]  }
  0x1d   :  { %349 = vmatprep.subr.bf16.mxu1 %v440_v0  ;;  %365 = vmatprep.mubr.msk.bf16.mxu1 %vm441_vm0, %v440_v0  ;;  %v385_v6 = vld [vmem:[#allocation4 + $0x30] sm:$0xff]   ;;  %v379_v7 = vld [vmem:[#allocation2 + $0x18] sm:$0xff]   ;;  %v386_v8 = vld [vmem:[#allocation4 + $0x28] sm:$0xff]  }
  0x1e   :  { %330 = vmatpush3.bf16.msra.mxu0 %v375_v1  ;;  %350 = vmatpush3.bf16.msra.mxu1 %v384_v4  ;;  %v380_v9 = vld [vmem:[#allocation2 + $0x10] sm:$0xff]   ;;  %v387_v10 = vld [vmem:[#allocation4 + $0x20] sm:$0xff]   ;;  %v381_v11 = vld [vmem:[#allocation2 + $0x8] sm:$0xff]  }
  0x1f   :  { %331 = vmatprep.subr.bf16.mxu0 %v440_v0  ;;  %351 = vmatprep.subr.bf16.mxu1 %v440_v0  ;;  %v388_v12 = vld [vmem:[#allocation4 + $0x18] sm:$0xff]   ;;  %v382_v13 = vld [vmem:[#allocation2] sm:$0xff]   ;;  %v389_v15 = vld [vmem:[#allocation4 + $0x10] sm:$0xff]  }
  0x20   :  { %v383_v14 = vld [vmem:[%s493_s0] sm:$0xff]   ;;  %v390_v16 = vld [vmem:[#allocation4 + $0x8] sm:$0xff]  }
  0x21   :  { %v391_v17 = vld [vmem:[#allocation4] sm:$0xff]  }
  0x22   :  { %332 = vmatpush3.bf16.msra.mxu0 %v376_v2  ;;  %352 = vmatpush3.bf16.msra.mxu1 %v385_v6  ;;  %v292_v18 = vld [vmem:[%s495_s2] ss:$0 sm:$0xff] }
  0x23   :  { %333 = vmatprep.subr.bf16.mxu0 %v440_v0  ;;  %353 = vmatprep.subr.bf16.mxu1 %v440_v0  ;;  %v302_v28 = vld [vmem:[%s497_s4] ss:$0 sm:$0xff] }
  0x26   :  { %334 = vmatpush3.bf16.msra.mxu0 %v377_v3  ;;  %354 = vmatpush3.bf16.msra.mxu1 %v386_v8 }
  0x27   :  { %335 = vmatprep.subr.bf16.mxu0 %v440_v0  ;;  %355 = vmatprep.subr.bf16.mxu1 %v440_v0 }
  0x2a   :  { %336 = vmatpush3.bf16.msra.mxu0 %v378_v5  ;;  %356 = vmatpush3.bf16.msra.mxu1 %v387_v10 }
  0x2b   :  { %337 = vmatprep.subr.bf16.mxu0 %v440_v0  ;;  %357 = vmatprep.subr.bf16.mxu1 %v440_v0 }
  0x2e   :  { %338 = vmatpush3.bf16.msra.mxu0 %v379_v7  ;;  %358 = vmatpush3.bf16.msra.mxu1 %v388_v12 }
  0x2f   :  { %339 = vmatprep.subr.bf16.mxu0 %v440_v0  ;;  %359 = vmatprep.subr.bf16.mxu1 %v440_v0 }
  0x32   :  { %340 = vmatpush3.bf16.msra.mxu0 %v380_v9  ;;  %360 = vmatpush3.bf16.msra.mxu1 %v389_v15 }
  0x33   :  { %341 = vmatprep.subr.bf16.mxu0 %v440_v0  ;;  %361 = vmatprep.subr.bf16.mxu1 %v440_v0 }
  0x36   :  { %342 = vmatpush3.bf16.msra.mxu0 %v381_v11  ;;  %362 = vmatpush3.bf16.msra.mxu1 %v390_v16 }
  0x37   :  { %343 = vmatprep.subr.bf16.mxu0 %v440_v0  ;;  %363 = vmatprep.subr.bf16.mxu1 %v440_v0 }
  0x3a   :  { %344 = vmatpush3.bf16.msra.mxu0 %v382_v13  ;;  %364 = vmatpush3.bf16.msra.mxu1 %v391_v17 }
  0x3d   :  { %346 = vmatmul.mubr.bf16.vlgmr.msra.gmra.mxu0 %v383_v14 }
  0xfd   :  { %v162_v19 = vpop.f32.mrf.mxu0 }
  0xfe   :  { %v163_v21 = vadd.f32 %v292_v18, %v162_v19 }
  0xff   :  { %v347_v20 = vpop.f32.mrf.mxu0 }
 0x100   :  { %v169_v25 = vmax.f32 %v163_v21, 0.0 }
 0x101   :  { %v165_v22 = vpop.f32.mrf.mxu0 }
 0x102   :  { %v166_v23 = vadd.f32 %v292_v18, %v165_v22 }
 0x103   :  { %v348_v24 = vpop.f32.mrf.mxu0 }
 0x104   :  { %v170_v26 = vmax.f32 %v166_v23, 0.0 }
 0x106   :  { %v171_v27 = vpack.c.bf16 %v170_v26, %v169_v25 }
 0x108   :  { %366 = vmatmul.mubr.bf16.vlgmr.msra.gmra.mxu1 %v171_v27 }
 0x1c8   :  { %v277_v29 = vpop.f32.mrf.mxu1 }
 0x1c9   :  { %v278_v30 = vadd.f32 %v302_v28, %v277_v29 }
 0x1ca   :  { %v367_v31 = vpop.f32.mrf.mxu1 }
 0x1cb   :  { %284 = vst [vmem:[%s498_s5] sm:$0xff] %v278_v30 }
 0x1cc   :  { %v280_v32 = vpop.f32.mrf.mxu1 }
 0x1cd   :  { %v281_v33 = vadd.f32 %v302_v28, %v280_v32 }
 0x1ce   :  { %v368_v34 = vpop.f32.mrf.mxu1 }
 0x1cf   :  { %285 = vst [vmem:[%s498_s5 + $0x8] sm:$0xff] %v281_v33 }
 0x1d0   :  { %290 = vsyncpa [#allocation3], 1 }
 0x1d1   :  { %291 = vsyncpa [#allocation5], 1 }

</bundles_post_ra>
